<compile_context>
chip_gen: v7x
topology: tpu7x:2x2x1
jax: 0.10.0
libtpu: 0.0.40
codegen_flags: <defaults>
</compile_context>

<pallas_src>
import functools
import math

import jax
import jax.numpy as jnp
from jax.experimental import pallas as pl
from jax.experimental.pallas import tpu as pltpu


def _pe_dropout_kernel(seed_ref, x_ref, pe_ref, o_ref, *, p, training):
    """One [T, W] tile of the flattened [S, B*D] input: add pe row + dropout."""
    x = x_ref[...].astype(jnp.float32)          # [T, W]
    pe = pe_ref[...].astype(jnp.float32)        # [1, W] resident row -> row broadcast
    y = x + pe

    if training and p > 0.0:
        t, w = x_ref.shape
        # Global linear index of every element in this tile.
        r = jax.lax.broadcasted_iota(jnp.int32, (t, w), 0)
        c = jax.lax.broadcasted_iota(jnp.int32, (t, w), 1)
        row0 = pl.program_id(0) * t
        idx = ((row0 + r) * w + c).astype(jnp.uint32)

        # Stateless integer hash (lowbias32-style mix) of (seed, index).
        seed = seed_ref[0].astype(jnp.uint32)
        h = idx ^ (seed * jnp.uint32(0x9E3779B1))
        h = h ^ (h >> 16)
        h = h * jnp.uint32(0x7FEB352D)
        h = h ^ (h >> 15)
        h = h * jnp.uint32(0x846CA68B)
        h = h ^ (h >> 16)

        # Integer-threshold dropout: drop iff top-23-bit value < p * 2^23.
        u23 = (h >> 9).astype(jnp.int32)
        thr = jnp.int32(int(round(p * (1 << 23))))
        keep = u23 >= thr
        y = jnp.where(keep, y * jnp.float32(1.0 / (1.0 - p)), jnp.float32(0.0))

    o_ref[...] = y.astype(o_ref.dtype)


def make_pe_buffer(d_model: int, max_len: int = 5000) -> jnp.ndarray:
    """Buffer setup (plain JAX glue) — mirrors the torch __init__."""
    position = jnp.arange(max_len, dtype=jnp.float32)[:, None]            # [L, 1]
    div_term = jnp.exp(
        jnp.arange(0, d_model, 2, dtype=jnp.float32) * (-math.log(10000.0) / d_model)
    )                                                                      # [D/2]
    pe = jnp.zeros((max_len, d_model), dtype=jnp.float32)
    pe = pe.at[:, 0::2].set(jnp.sin(position * div_term))
    pe = pe.at[:, 1::2].set(jnp.cos(position * div_term))
    return pe


def _choose_tile_rows(S: int, W: int, itemsize: int, target_bytes: int = 2 << 20) -> int:
    """Largest multiple-of-8 row count whose block stays under ~2 MiB."""
    rows = max(8, (target_bytes // max(1, W * itemsize)) // 8 * 8)
    return int(min(S, rows))


def positional_encoding(x: jnp.ndarray,
                        pe: jnp.ndarray,
                        *,
                        p: float = 0.1,
                        training: bool = True,
                        seed: int = 0,
                        tile_rows: int | None = None) -> jnp.ndarray:
    """x: [seq_len, batch, d_model]; pe: [max_len, d_model]."""
    S, B, D = x.shape
    # Original module's broadcasting (pe [S,D] against x [S,B,D]) requires B == S.
    assert B == S, "PositionalEncoding (as written in torch) requires batch == seq_len"
    W = B * D

    # Lane-dense 2D layout: [S, B*D]; pe[:S] flattens to one [1, B*D] row whose
    # column b*D+d holds pe[b, d] — exactly the value torch adds to x[s, b, d].
    x2d = x.reshape(S, W)
    pe_row = pe[:S].reshape(1, S * D)            # S*D == B*D since B == S
    seed_arr = jnp.array([seed], dtype=jnp.int32)

    if tile_rows is None:
        tile_rows = _choose_tile_rows(S, W, x2d.dtype.itemsize)
    grid = (pl.cdiv(S, tile_rows),)

    kernel = functools.partial(_pe_dropout_kernel, p=float(p), training=bool(training))

    out2d = pl.pallas_call(
        kernel,
        out_shape=jax.ShapeDtypeStruct((S, W), x.dtype),
        grid=grid,
        in_specs=[
            pl.BlockSpec(memory_space=pltpu.MemorySpace.SMEM),      # seed scalar
            pl.BlockSpec((tile_rows, W), lambda i: (i, 0)),         # x tile
            pl.BlockSpec((1, W), lambda i: (0, 0)),                 # pe row (resident)
        ],
        out_specs=pl.BlockSpec((tile_rows, W), lambda i: (i, 0)),
        compiler_params=pltpu.CompilerParams(
            dimension_semantics=("parallel",),       # shards grid over v7x's 2 TCs
            vmem_limit_bytes=32 * 1024 * 1024,       # above v5e's 16 MiB default, <= all gens
        ),
    )(seed_arr, x2d, pe_row)

    return out2d.reshape(S, B, D)


if __name__ == "__main__":
    d_model = 32
    seq_len = 8
    batch = 8            # must equal seq_len for this module's broadcasting (see note)
    dropout_p = 0.1

    key = jax.random.PRNGKey(0)
    x = jax.random.normal(key, (seq_len, batch, d_model), dtype=jnp.float32)
    pe = make_pe_buffer(d_model, max_len=5000)

    # Eval mode (dropout = identity): compare against plain-JAX reference.
    out_eval = positional_encoding(x, pe, p=dropout_p, training=False)
    out_eval = jax.block_until_ready(out_eval)
    ref = x + pe[:seq_len]                       # same trailing-dim broadcast as torch
    assert out_eval.shape == x.shape
    assert jnp.allclose(out_eval, ref, atol=1e-6, rtol=1e-6)

    # Train mode (inverted dropout, deterministic seed).
    out_train = positional_encoding(x, pe, p=dropout_p, training=True, seed=1234)
    out_train = jax.block_until_ready(out_train)
    assert out_train.shape == x.shape
    scaled = ref / (1.0 - dropout_p)
    ok = jnp.isclose(out_train, scaled, atol=1e-5, rtol=1e-5) | (out_train == 0.0)
    assert bool(jnp.all(ok))
    n_drop = int(jnp.sum(out_train == 0.0))
    assert 0 < n_drop < out_train.size           # some dropped, not all dropped

    print("KERNEL_OK")
</pallas_src>

<mosaic_0001>
module attributes {stable_mosaic.version = 11 : i64} {
  func.func @_pe_dropout_kernel(%arg0: i32, %arg1: memref<1xi32, #tpu.memory_space<smem>>, %arg2: memref<8x256xf32, #tpu.memory_space<vmem>>, %arg3: memref<1x256xf32, #tpu.memory_space<vmem>>, %arg4: memref<8x256xf32, #tpu.memory_space<vmem>>) attributes {dimension_semantics = [#tpu.dimension_semantics<parallel>], iteration_bounds = array<i64: 1>, scalar_prefetch = 0 : i64, scratch_operands = 0 : i64, tpu.core_type = #tpu.core_type<tc>, window_params = [{transform_indices = @transform_0, window_bounds = array<i64: 1>}, {transform_indices = @transform_1, window_bounds = array<i64: 8, 256>}, {pipeline_mode = #tpu.pipeline_mode<synchronous>, transform_indices = @transform_2, window_bounds = array<i64: 1, 256>}, {transform_indices = @transform_3, window_bounds = array<i64: 8, 256>}]} {
    %c0 = arith.constant 0 : index
    %c0_0 = arith.constant 0 : index
    %0 = vector.load %arg2[%c0, %c0_0] : memref<8x256xf32, #tpu.memory_space<vmem>>, vector<8x256xf32>
    %c0_1 = arith.constant 0 : index
    %c0_2 = arith.constant 0 : index
    %1 = vector.load %arg3[%c0_1, %c0_2] : memref<1x256xf32, #tpu.memory_space<vmem>>, vector<1x256xf32>
    %2 = vector.broadcast %1 : vector<1x256xf32> to vector<8x256xf32>
    %3 = arith.addf %0, %2 : vector<8x256xf32>
    %c0_3 = arith.constant 0 : index
    %c0_4 = arith.constant 0 : index
    %4 = vector.load %arg4[%c0_3, %c0_4] : memref<8x256xf32, #tpu.memory_space<vmem>>, vector<8x256xf32>
    tpu.vector_store %arg4[%c0_3, %c0_4], %3 {strides = array<i32>} : memref<8x256xf32, #tpu.memory_space<vmem>>, vector<8x256xf32>,
    return
  }
  func.func @transform_0(%arg0: i32) -> i32 {
    %c0_i32 = arith.constant 0 : i32
    %c0_i32_0 = arith.constant 0 : i32
    return %c0_i32 : i32
  }
  func.func @transform_1(%arg0: i32) -> (i32, i32) {
    %c0_i32 = arith.constant 0 : i32
    %c0_i32_0 = arith.constant 0 : i32
    return %arg0, %c0_i32 : i32, i32
  }
  func.func @transform_2(%arg0: i32) -> (i32, i32) {
    %c0_i32 = arith.constant 0 : i32
    %c0_i32_0 = arith.constant 0 : i32
    %c0_i32_1 = arith.constant 0 : i32
    return %c0_i32, %c0_i32_0 : i32, i32
  }
  func.func @transform_3(%arg0: i32) -> (i32, i32) {
    %c0_i32 = arith.constant 0 : i32
    %c0_i32_0 = arith.constant 0 : i32
    return %arg0, %c0_i32 : i32, i32
  }
}

</mosaic_0001>

<bundles_post_ra>
// kernel: tpu_custom_call.1
= control target key start
LH: loop header
LB: loop body
LE: loop exit
PB: predicated region body
PF: predicated region fallthrough
CT: control target
= control target key end

     0   :  { %9 = vsyncpa [#allocation4], 0  ;;  %s160_s0 = inlined_call_operand.<no memory space> [shape: s32[1], index: 0, kind: input, shape index: {}]   ;;  %s161_s1 = inlined_call_operand.hbm [shape: f32[8,256], index: 1, kind: input, shape index: {}]   ;;  %s162_s2 = inlined_call_operand.vmem [shape: f32[1,256], index: 2, kind: input, shape index: {}]   ;;  %s163_s3 = inlined_call_operand.hbm [shape: f32[8,256], index: 3, kind: output, shape index: {}]  }
   0x1   :  { %10 = vsyncpa [#allocation5], 0  ;;  %s111_s12 = smov [#allocation3]   ;;  %s63_s16 = scalar_lea.hbm %s161_s1, 256 }
   0x2   :  { %s19_s13 = sshll.u32 %s111_s12, 4  ;;  %p64_p0 = scmp.ne.s32.totalorder %s161_s1, %s63_s16  ;;  %s20_s13 = int_to_ptr.vmem [resolvable:$true] %s19_s13 }
   0x3   :  { %p67_p1 = scmp.lt.u32.totalorder %s63_s16, %s161_s1 }
   0x5   :  { %p69_p2 = pnand %p67_p1, %p64_p0 }
   0x7   :  { %72 = shalt.err (!%p69_p2)
}
   0x8   :  { %s73_s20 = scalar_lea.vmem %s20_s13, 256  ;;  %p78_p4 = scmp.lt.s32.totalorder %s20_s13, %s20_s13 }
   0x9   :  { %p74_p3 = scmp.ne.s32.totalorder %s20_s13, %s73_s20  ;;  %p79_p5 = scmp.lt.s32.totalorder %s73_s20, %s73_s20 }
   0xb   :  { %p80_p6 = por %p79_p5, %p78_p4 }
   0xd   :  { %p81_p7 = pnand %p80_p6, %p74_p3 }
   0xf   :  { %84 = shalt.err (!%p81_p7)
}
  0x10   :  { %22 = dma.hbm_to_vmem [thread:$0]  %s161_s1, 256, %s20_s13, [#allocation4]  }
  0x11   :  { %107 = dma.done.wait [#allocation4], 256  }
  0x12   :  { %108 = vsyncadd [#allocation4], 4294967040  ;;  %v32_v0 = vlaneseq  ;;  %v28_v4 = vld [vmem:[#allocation3] sm:$0xff]  ;;  %v29_v6 = vld [vmem:[#allocation3 + $0x8] sm:$0xff]  ;;  %s112_s25 = smov [#allocation6]  }
  0x13   :  { %v30_v5 = vld [vmem:[%s162_s2] sm:$0x3]  ;;  %s52_s26 = sshll.u32 %s112_s25, 4  ;;  %s53_s26 = int_to_ptr.vmem [resolvable:$true] %s52_s26 }
  0x14   :  { %v33_v1 = vshrl.u32 %v32_v0, 7  ;;  %s85_s1 = scalar_lea.vmem %s53_s26, 256  ;;  %p90_p9 = scmp.lt.s32.totalorder %s53_s26, %s53_s26 }
  0x15   :  { %p86_p8 = scmp.ne.s32.totalorder %s53_s26, %s85_s1  ;;  %p91_p10 = scmp.lt.s32.totalorder %s85_s1, %s85_s1 }
  0x16   :  { %v34_v2 = vsub.s32 0, %v33_v1  ;;  %v38_v3 = vsub.s32 1, %v33_v1 }
  0x17   :  { %p92_p11 = por %p91_p10, %p90_p9 }
  0x18   :  { %v35_v7 = vrot.slane %v30_v5, %v34_v2  ;;  %v39_v8 = vrot.slane %v30_v5, %v38_v3 }
  0x19   :  { %p93_p12 = pnand %p92_p11, %p86_p8 }
  0x1a   :  { %v42_v9 = vadd.f32 %v35_v7, %v28_v4  ;;  %v43_v10 = vadd.f32 %v39_v8, %v29_v6 }
  0x1c   :  { %44 = vst [vmem:[#allocation6] sm:$0xff] %v42_v9  ;;  %45 = vst [vmem:[#allocation6 + $0x8] sm:$0xff] %v43_v10 }
  0x1d   :  { %96 = shalt.err (!%p93_p12)
}
  0x1e   :  { %s97_s2 = scalar_lea.hbm %s163_s3, 256 }
  0x1f   :  { %p98_p13 = scmp.ne.s32.totalorder %s163_s3, %s97_s2  ;;  %p101_p0 = scmp.lt.u32.totalorder %s97_s2, %s163_s3 }
  0x21   :  { %p103_p1 = pnand %p101_p0, %p98_p13 }
  0x23   :  { %106 = shalt.err (!%p103_p1)
}
  0x24   :  { %55 = dma.vmem_to_hbm [thread:$0]  %s53_s26, 256, %s163_s3, [#allocation5]  }
  0x25   :  { %109 = dma.done.wait [#allocation5], 256  }
  0x26   :  { %110 = vsyncadd [#allocation5], 4294967040 }
  0x27   :  { %59 = vsyncpa [#allocation4], 1 }
  0x28   :  { %60 = vsyncpa [#allocation5], 1 }

</bundles_post_ra>
